<compile_context>
chip_gen: v6e
topology: v6e:2x2x1
jax: 0.10.0
libtpu: 0.0.40
codegen_flags: <defaults>
</compile_context>

<pallas_src>
import jax
import jax.numpy as jnp
from jax.experimental import pallas as pl
from jax.experimental.pallas import tpu as pltpu


def _mlp_kernel(cw_ref, cb_ref, x_ref,
                w1_ref, b1_ref, w2_ref, b2_ref, w3_ref, b3_ref,
                o_ref):
    # x_ref: (6, tm) bf16 tile — features on sublanes, rows (tokens) on lanes.
    cw = cw_ref[0].astype(jnp.bfloat16)        # conv weight scalar (SMEM)
    cb = cb_ref[0].astype(jnp.bfloat16)        # conv bias scalar (SMEM)

    # Conv2d(1,1,1), single channel == scalar multiply + scalar bias, ReLU.
    h = jnp.maximum(x_ref[...] * cw + cb, 0)                          # (6,  tm) bf16

    # Linear(6, 64) + ReLU  (torch (out, in) weight layout; bf16 on the MXU,
    # f32 accumulation; bias + ReLU in f32, recast to bf16 for the next MXU op).
    h = jnp.dot(w1_ref[...], h, preferred_element_type=jnp.float32)   # (64, tm) f32
    h = jnp.maximum(h + b1_ref[...], 0.0).astype(jnp.bfloat16)

    # Linear(64, 32) + ReLU
    h = jnp.dot(w2_ref[...], h, preferred_element_type=jnp.float32)   # (32, tm) f32
    h = jnp.maximum(h + b2_ref[...], 0.0).astype(jnp.bfloat16)

    # Linear(32, 6) + Sigmoid (sigmoid on the EUP, f32)
    h = jnp.dot(w3_ref[...], h, preferred_element_type=jnp.float32)   # (6,  tm) f32
    o_ref[...] = jax.nn.sigmoid(h + b3_ref[...])


def _choose_tile(M, *, max_tm=8192, min_tm=128, target_blocks=8):
    """Row tile: big enough to amortize per-grid-step overhead, small enough
    that the single 'parallel' grid axis has several steps to shard across
    TensorCores (matters on 2-TC v7x; harmless on v5e/v6e)."""
    tm = (M // target_blocks) // 128 * 128
    return max(min_tm, min(max_tm, tm))


def model_forward(x, params):
    """x: (N, 1, H, 6) float32 NCHW.  Returns (N, H, 6) f32 == torch out[:, -1, :]."""
    N, C, H, W = x.shape
    assert C == 1 and W == 6
    M = N * C * H

    (cw, cb, w1, b1, w2, b2, w3, b3) = params
    # MXU-native bf16 weights (a few KB; conversion fuses / is negligible).
    w1b = w1.astype(jnp.bfloat16)
    w2b = w2.astype(jnp.bfloat16)
    w3b = w3.astype(jnp.bfloat16)

    tm = _choose_tile(M)
    Mp = pl.cdiv(M, tm) * tm

    # Lane-dense bf16 input: (features=6, rows=Mp).  Transpose + cast + pad
    # fuse into a single half-width relayout pass under jit.
    x2t = x.reshape(M, W).T.astype(jnp.bfloat16)                      # (6, M) bf16
    if Mp != M:
        x2t = jnp.pad(x2t, ((0, 0), (0, Mp - M)))

    smem = pl.BlockSpec(memory_space=pltpu.MemorySpace.SMEM)
    full = lambda arr: pl.BlockSpec(arr.shape, lambda i: (0,) * arr.ndim)

    cost = pl.CostEstimate(
        flops=2 * M * (6 * 64 + 64 * 32 + 32 * 6),
        transcendentals=6 * M,                         # sigmoid
        bytes_accessed=M * (6 * 2 + 6 * 4))            # bf16 in + f32 out

    out2t = pl.pallas_call(
        _mlp_kernel,
        out_shape=jax.ShapeDtypeStruct((6, Mp), jnp.float32),
        grid_spec=pltpu.PrefetchScalarGridSpec(
            num_scalar_prefetch=0,
            grid=(Mp // tm,),
            in_specs=[
                smem, smem,                                   # conv scalars
                pl.BlockSpec((6, tm), lambda i: (0, i)),      # x tile (lane-dense)
                full(w1b), full(b1),
                full(w2b), full(b2),
                full(w3b), full(b3),
            ],
            out_specs=pl.BlockSpec((6, tm), lambda i: (0, i)),
        ),
        compiler_params=pltpu.CompilerParams(
            dimension_semantics=("parallel",)),
        cost_estimate=cost,
    )(cw, cb, x2t, w1b, b1, w2b, b2, w3b, b3)

    # Drop row padding, transpose back; out[:, -1, :] picks channel 0 -> (N, H, 6).
    # Consumers that can accept the lane-dense (6, M) layout directly should,
    # to skip this extra HBM pass.
    return out2t[:, :M].T.reshape(N, H, 6)


def init_params(key):
    """Deterministic synthetic parameters matching the torch module shapes."""
    ks = jax.random.split(key, 8)
    u = lambda k, shape, bound: jax.random.uniform(
        k, shape, jnp.float32, minval=-bound, maxval=bound)

    # Conv2d(1,1,1): weight (1,1,1,1), bias (1,) -> kept as 1-element scalars.
    cw = u(ks[0], (1,), 1.0)
    cb = u(ks[1], (1,), 1.0)
    # Linear layers: torch (out_features, in_features) weight layout, biases as
    # (out_features, 1) columns for broadcast along the lane (row) axis.
    w1 = u(ks[2], (64, 6), 1.0 / jnp.sqrt(6.0))
    b1 = u(ks[3], (64, 1), 1.0 / jnp.sqrt(6.0))
    w2 = u(ks[4], (32, 64), 1.0 / jnp.sqrt(64.0))
    b2 = u(ks[5], (32, 1), 1.0 / jnp.sqrt(64.0))
    w3 = u(ks[6], (6, 32), 1.0 / jnp.sqrt(32.0))
    b3 = u(ks[7], (6, 1), 1.0 / jnp.sqrt(32.0))
    return (cw, cb, w1, b1, w2, b2, w3, b3)


def _reference(x, params):
    """Pure-JAX f32 reference of the torch forward (for correctness check)."""
    cw, cb, w1, b1, w2, b2, w3, b3 = params
    h = jnp.maximum(x * cw[0] + cb[0], 0.0)                 # conv(1x1) + relu
    h = jnp.maximum(h @ w1.T + b1[:, 0], 0.0)               # Linear(6,64) + relu
    h = jnp.maximum(h @ w2.T + b2[:, 0], 0.0)               # Linear(64,32) + relu
    h = jax.nn.sigmoid(h @ w3.T + b3[:, 0])                 # Linear(32,6) + sigmoid
    return h[:, -1, :]                                      # (N, H, 6)


if __name__ == "__main__":
    key = jax.random.PRNGKey(0)
    pkey, xkey = jax.random.split(key)

    params = init_params(pkey)

    # Small input consistent with the forward: NCHW, C=1, W=6 (Linear(6,...)).
    N, H = 2, 16
    x = jax.random.normal(xkey, (N, 1, H, 6), dtype=jnp.float32)

    fwd = jax.jit(model_forward)
    out = jax.block_until_ready(fwd(x, params))

    assert out.shape == (N, H, 6), out.shape
    assert bool(jnp.all(jnp.isfinite(out)))
    assert bool(jnp.all((out >= 0.0) & (out <= 1.0)))       # sigmoid range

    ref = _reference(x, params)
    # bf16 matmul operands (f32 accumulation) -> loosened tolerance vs f32 ref.
    assert bool(jnp.allclose(out, ref, atol=3e-2, rtol=3e-2))

    print("KERNEL_OK")
</pallas_src>

<mosaic_0001>
module attributes {stable_mosaic.version = 11 : i64} {
  func.func @_mlp_kernel(%arg0: i32, %arg1: memref<1xf32, #tpu.memory_space<smem>>, %arg2: memref<1xf32, #tpu.memory_space<smem>>, %arg3: memref<6x128xbf16, #tpu.memory_space<vmem>>, %arg4: memref<64x6xbf16, #tpu.memory_space<vmem>>, %arg5: memref<64x1xf32, #tpu.memory_space<vmem>>, %arg6: memref<32x64xbf16, #tpu.memory_space<vmem>>, %arg7: memref<32x1xf32, #tpu.memory_space<vmem>>, %arg8: memref<6x32xbf16, #tpu.memory_space<vmem>>, %arg9: memref<6x1xf32, #tpu.memory_space<vmem>>, %arg10: memref<6x128xf32, #tpu.memory_space<vmem>>) attributes {dimension_semantics = [#tpu.dimension_semantics<parallel>], iteration_bounds = array<i64: 1>, scalar_prefetch = 0 : i64, scratch_operands = 0 : i64, tpu.core_type = #tpu.core_type<tc>, window_params = [{transform_indices = @transform_0, window_bounds = array<i64: 1>}, {transform_indices = @transform_1, window_bounds = array<i64: 1>}, {transform_indices = @transform_2, window_bounds = array<i64: 6, 128>}, {pipeline_mode = #tpu.pipeline_mode<synchronous>, transform_indices = @transform_3, window_bounds = array<i64: 64, 6>}, {pipeline_mode = #tpu.pipeline_mode<synchronous>, transform_indices = @transform_4, window_bounds = array<i64: 64, 1>}, {pipeline_mode = #tpu.pipeline_mode<synchronous>, transform_indices = @transform_5, window_bounds = array<i64: 32, 64>}, {pipeline_mode = #tpu.pipeline_mode<synchronous>, transform_indices = @transform_6, window_bounds = array<i64: 32, 1>}, {pipeline_mode = #tpu.pipeline_mode<synchronous>, transform_indices = @transform_7, window_bounds = array<i64: 6, 32>}, {pipeline_mode = #tpu.pipeline_mode<synchronous>, transform_indices = @transform_8, window_bounds = array<i64: 6, 1>}, {transform_indices = @transform_9, window_bounds = array<i64: 6, 128>}]} {
    %c0 = arith.constant 0 : index
    %0 = memref.load %arg1[%c0] : memref<1xf32, #tpu.memory_space<smem>>
    %1 = arith.truncf %0 : f32 to bf16
    %c0_0 = arith.constant 0 : index
    %2 = memref.load %arg2[%c0_0] : memref<1xf32, #tpu.memory_space<smem>>
    %3 = arith.truncf %2 : f32 to bf16
    %c0_1 = arith.constant 0 : index
    %c0_2 = arith.constant 0 : index
    %4 = vector.load %arg3[%c0_1, %c0_2] : memref<6x128xbf16, #tpu.memory_space<vmem>>, vector<6x128xbf16>
    %5 = vector.broadcast %1 : bf16 to vector<6x128xbf16>
    %6 = arith.mulf %4, %5 : vector<6x128xbf16>
    %7 = vector.broadcast %3 : bf16 to vector<6x128xbf16>
    %8 = arith.addf %6, %7 : vector<6x128xbf16>
    %cst = arith.constant 0.000000e+00 : bf16
    %9 = vector.broadcast %cst : bf16 to vector<6x128xbf16>
    %10 = arith.maximumf %8, %9 : vector<6x128xbf16>
    %c0_3 = arith.constant 0 : index
    %c0_4 = arith.constant 0 : index
    %11 = vector.load %arg4[%c0_3, %c0_4] : memref<64x6xbf16, #tpu.memory_space<vmem>>, vector<64x6xbf16>
    %cst_5 = arith.constant dense<0.000000e+00> : vector<64x128xf32>
    %12 = tpu.matmul %11, %10, %cst_5 {dimension_numbers = #tpu.dot_dimension_numbers<[1], [0], [0], [1], [0, 0, 1, 1], [], []>} : vector<64x6xbf16>, vector<6x128xbf16>, vector<64x128xf32> -> vector<64x128xf32>
    %c0_6 = arith.constant 0 : index
    %c0_7 = arith.constant 0 : index
    %13 = vector.load %arg5[%c0_6, %c0_7] : memref<64x1xf32, #tpu.memory_space<vmem>>, vector<64x1xf32>
    %14 = vector.broadcast %13 : vector<64x1xf32> to vector<64x128xf32>
    %15 = arith.addf %12, %14 : vector<64x128xf32>
    %cst_8 = arith.constant 0.000000e+00 : f32
    %16 = vector.broadcast %cst_8 : f32 to vector<64x128xf32>
    %17 = arith.maximumf %15, %16 : vector<64x128xf32>
    %18 = arith.truncf %17 : vector<64x128xf32> to vector<64x128xbf16>
    %c0_9 = arith.constant 0 : index
    %c0_10 = arith.constant 0 : index
    %19 = vector.load %arg6[%c0_9, %c0_10] : memref<32x64xbf16, #tpu.memory_space<vmem>>, vector<32x64xbf16>
    %cst_11 = arith.constant dense<0.000000e+00> : vector<32x128xf32>
    %20 = tpu.matmul %19, %18, %cst_11 {dimension_numbers = #tpu.dot_dimension_numbers<[1], [0], [0], [1], [0, 0, 1, 1], [], []>} : vector<32x64xbf16>, vector<64x128xbf16>, vector<32x128xf32> -> vector<32x128xf32>
    %c0_12 = arith.constant 0 : index
    %c0_13 = arith.constant 0 : index
    %21 = vector.load %arg7[%c0_12, %c0_13] : memref<32x1xf32, #tpu.memory_space<vmem>>, vector<32x1xf32>
    %22 = vector.broadcast %21 : vector<32x1xf32> to vector<32x128xf32>
    %23 = arith.addf %20, %22 : vector<32x128xf32>
    %cst_14 = arith.constant 0.000000e+00 : f32
    %24 = vector.broadcast %cst_14 : f32 to vector<32x128xf32>
    %25 = arith.maximumf %23, %24 : vector<32x128xf32>
    %26 = arith.truncf %25 : vector<32x128xf32> to vector<32x128xbf16>
    %c0_15 = arith.constant 0 : index
    %c0_16 = arith.constant 0 : index
    %27 = vector.load %arg8[%c0_15, %c0_16] : memref<6x32xbf16, #tpu.memory_space<vmem>>, vector<6x32xbf16>
    %cst_17 = arith.constant dense<0.000000e+00> : vector<6x128xf32>
    %28 = tpu.matmul %27, %26, %cst_17 {dimension_numbers = #tpu.dot_dimension_numbers<[1], [0], [0], [1], [0, 0, 1, 1], [], []>} : vector<6x32xbf16>, vector<32x128xbf16>, vector<6x128xf32> -> vector<6x128xf32>
    %c0_18 = arith.constant 0 : index
    %c0_19 = arith.constant 0 : index
    %29 = vector.load %arg9[%c0_18, %c0_19] : memref<6x1xf32, #tpu.memory_space<vmem>>, vector<6x1xf32>
    %30 = vector.broadcast %29 : vector<6x1xf32> to vector<6x128xf32>
    %31 = arith.addf %28, %30 : vector<6x128xf32>
    %32 = arith.negf %31 : vector<6x128xf32>
    %33 = math.exp %32 : vector<6x128xf32>
    %cst_20 = arith.constant 1.000000e+00 : f32
    %34 = vector.broadcast %cst_20 : f32 to vector<6x128xf32>
    %35 = arith.addf %34, %33 : vector<6x128xf32>
    %36 = arith.divf %34, %35 : vector<6x128xf32>
    %c0_21 = arith.constant 0 : index
    %c0_22 = arith.constant 0 : index
    %37 = vector.load %arg10[%c0_21, %c0_22] : memref<6x128xf32, #tpu.memory_space<vmem>>, vector<6x128xf32>
    tpu.vector_store %arg10[%c0_21, %c0_22], %36 {strides = array<i32>} : memref<6x128xf32, #tpu.memory_space<vmem>>, vector<6x128xf32>,
    return
  }
  func.func @transform_0(%arg0: i32) -> i32 {
    %c0_i32 = arith.constant 0 : i32
    %c0_i32_0 = arith.constant 0 : i32
    return %c0_i32 : i32
  }
  func.func @transform_1(%arg0: i32) -> i32 {
    %c0_i32 = arith.constant 0 : i32
    %c0_i32_0 = arith.constant 0 : i32
    return %c0_i32 : i32
  }
  func.func @transform_2(%arg0: i32) -> (i32, i32) {
    %c0_i32 = arith.constant 0 : i32
    %c0_i32_0 = arith.constant 0 : i32
    return %c0_i32, %arg0 : i32, i32
  }
  func.func @transform_3(%arg0: i32) -> (i32, i32) {
    %c0_i32 = arith.constant 0 : i32
    %c0_i32_0 = arith.constant 0 : i32
    %c0_i32_1 = arith.constant 0 : i32
    return %c0_i32, %c0_i32_0 : i32, i32
  }
  func.func @transform_4(%arg0: i32) -> (i32, i32) {
    %c0_i32 = arith.constant 0 : i32
    %c0_i32_0 = arith.constant 0 : i32
    %c0_i32_1 = arith.constant 0 : i32
    return %c0_i32, %c0_i32_0 : i32, i32
  }
  func.func @transform_5(%arg0: i32) -> (i32, i32) {
    %c0_i32 = arith.constant 0 : i32
    %c0_i32_0 = arith.constant 0 : i32
    %c0_i32_1 = arith.constant 0 : i32
    return %c0_i32, %c0_i32_0 : i32, i32
  }
  func.func @transform_6(%arg0: i32) -> (i32, i32) {
    %c0_i32 = arith.constant 0 : i32
    %c0_i32_0 = arith.constant 0 : i32
    %c0_i32_1 = arith.constant 0 : i32
    return %c0_i32, %c0_i32_0 : i32, i32
  }
  func.func @transform_7(%arg0: i32) -> (i32, i32) {
    %c0_i32 = arith.constant 0 : i32
    %c0_i32_0 = arith.constant 0 : i32
    %c0_i32_1 = arith.constant 0 : i32
    return %c0_i32, %c0_i32_0 : i32, i32
  }
  func.func @transform_8(%arg0: i32) -> (i32, i32) {
    %c0_i32 = arith.constant 0 : i32
    %c0_i32_0 = arith.constant 0 : i32
    %c0_i32_1 = arith.constant 0 : i32
    return %c0_i32, %c0_i32_0 : i32, i32
  }
  func.func @transform_9(%arg0: i32) -> (i32, i32) {
    %c0_i32 = arith.constant 0 : i32
    %c0_i32_0 = arith.constant 0 : i32
    return %c0_i32, %arg0 : i32, i32
  }
}

</mosaic_0001>

<bundles_post_ra>
// kernel: model_forward.1
= control target key start
LH: loop header
LB: loop body
LE: loop exit
PB: predicated region body
PF: predicated region fallthrough
CT: control target
= control target key end

     0   :  { %vm145_vm0 = vcmask 48128   ;;  %v475_v1 = vmov 0   ;;  %vm158_vm1 = vcmask 1042432   ;;  %vm277_vm2 = vcmask 523264   ;;  %s634_s0 = inlined_call_operand.<no memory space> [shape: f32[1], index: 0, kind: input, shape index: {}]   ;;  %s635_s1 = inlined_call_operand.<no memory space> [shape: f32[1], index: 1, kind: input, shape index: {}]   ;;  %s636_s3 = inlined_call_operand.vmem [shape: bf16[64,6], index: 3, kind: input, shape index: {}]   ;;  %s637_s4 = inlined_call_operand.vmem [shape: f32[64,1], index: 4, kind: input, shape index: {}]   ;;  %s638_s2 = inlined_call_operand.vmem [shape: bf16[6,128], index: 2, kind: input, shape index: {}]   ;;  %s639_s6 = inlined_call_operand.vmem [shape: f32[32,1], index: 6, kind: input, shape index: {}]   ;;  %s640_s8 = inlined_call_operand.vmem [shape: f32[6,1], index: 8, kind: input, shape index: {}]   ;;  %s641_s5 = inlined_call_operand.vmem [shape: bf16[32,64], index: 5, kind: input, shape index: {}]   ;;  %s642_s7 = inlined_call_operand.vmem [shape: bf16[6,32], index: 7, kind: input, shape index: {}]   ;;  %s643_s9 = inlined_call_operand.vmem [shape: f32[6,128], index: 9, kind: output, shape index: {}]  }
   0x1   :  { %p37_p0 = scmp.ne.f32.partialorder %s634_s0, %s634_s0  ;;  %s38_s13 = sshrl.u32 %s634_s0, 16  ;;  %v465_v0 = vld [vmem:[%s636_s3] sm:$0xff]   ;;  %463 = vset.pattern.permute.xlu0 %v475_v1  ;;  %464 = vset.pattern.permute.xlu1 %v475_v1  ;;  %v83_v2 = vld [vmem:[%s637_s4 + $0x30] sm:$0xff]  ;;  %v84_v4 = vld [vmem:[%s637_s4 + $0x38] sm:$0xff]  ;;  %v476_v63 = vmov 0.0   ;;  %vm477_vm3 = vmmov 0  }
   0x2   :  { %s39_s16 = sand.u32 1, %s38_s13  ;;  %p48_p1 = scmp.ne.f32.partialorder %s635_s1, %s635_s1  ;;  %431 = vmatprep.mubr.msk.bf16.mxu0 %vm145_vm0, %v465_v0  ;;  %117 = vperm.xlu0 %463, %v83_v2   ;;  %v81_v3 = vld [vmem:[%s637_s4 + $0x20] sm:$0xff]  ;;  %v82_v5 = vld [vmem:[%s637_s4 + $0x28] sm:$0xff]  ;;  %v79_v7 = vld [vmem:[%s637_s4 + $0x10] sm:$0xff]  ;;  %vm346_vm4 = vcmask 261120  }
   0x3   :  { %s40_s19 = sadd.s32 32767, %s39_s16  ;;  %s49_s22 = sshrl.u32 %s635_s1, 16  ;;  %107 = vperm.xlu1 %464, %v81_v3   ;;  %v57_v6 = vld [vmem:[%s638_s2] sm:$0x7]  ;;  %v80_v9 = vld [vmem:[%s637_s4 + $0x18] sm:$0xff]  ;;  %v78_v14 = vld [vmem:[%s637_s4 + $0x8] sm:$0xff] }
   0x4   :  { %s41_s25 = sadd.s32 %s40_s19, %s634_s0  ;;  %s50_s26 = sand.u32 1, %s49_s22  ;;  %v77_v13 = vld [vmem:[%s637_s4] sm:$0xff]  ;;  %v466_v17 = vld [vmem:[%s636_s3 + $0x8] sm:$0xff]   ;;  %v245_v18 = vld [vmem:[%s639_s6 + $0x10] sm:$0xff] }
   0x5   :  { %s42_s27 = sand.u32 4294901760, %s41_s25  ;;  %s51_s28 = sadd.s32 32767, %s50_s26  ;;  %v467_v19 = vld [vmem:[%s636_s3 + $0x10] sm:$0xff]   ;;  %v246_v20 = vld [vmem:[%s639_s6 + $0x18] sm:$0xff]  ;;  %v243_v21 = vld [vmem:[%s639_s6] sm:$0xff] }
   0x6   :  { %s645_s27 = smov (%p37_p0, %s42_s27), 2143289344  ;;  %s52_s18 = sadd.s32 %s51_s28, %s635_s1  ;;  %122 = vperm.xlu0 %463, %v84_v4   ;;  %v244_v22 = vld [vmem:[%s639_s6 + $0x8] sm:$0xff]  ;;  %v468_v23 = vld [vmem:[%s636_s3 + $0x18] sm:$0xff]   ;;  %v340_v24 = vld [vmem:[%s640_s8] sm:$0x3f] }
   0x7   :  { %s45_s21 = sshrl.u32 %s645_s27, 16  ;;  %s53_s22 = sand.u32 4294901760, %s52_s18  ;;  %112 = vperm.xlu1 %464, %v82_v5   ;;  %v469_v25 = vld [vmem:[%s641_s5] sm:$0xff]   ;;  %v470_v62 = vld [vmem:[%s641_s5 + $0x8] sm:$0xff]  }
   0x8   :  { %s647_s22 = smov (%p48_p1, %s53_s22), 2143289344  ;;  %s58_s10 = sshll.u32 %s45_s21, 16  ;;  %447 = vmatprep.mubr.msk.bf16.mxu1 %vm277_vm2, %v469_v25 }
   0x9   :  { %s56_s27 = sshrl.u32 %s647_s22, 16  ;;  %s59_s11 = sor.u32 %s58_s10, %s45_s21 }
   0xa   :  { %v60_v8 = vstv %s59_s11  ;;  %s63_s14 = sshll.u32 %s56_s27, 16  ;;  %97 = vperm.xlu0 %463, %v79_v7  }
   0xb   :  { %v62_v10 = vmul.bf16 %v60_v8, %v57_v6  ;;  %s64_s1 = sor.u32 %s63_s14, %s56_s27  ;;  %102 = vperm.xlu1 %464, %v80_v9  }
   0xc   :  { %v65_v11 = vstv %s64_s1 }
   0xd   :  { %v67_v12 = vadd.bf16 %v65_v11, %v62_v10 }
   0xe   :  { %87 = vperm.xlu0 %463, %v77_v13  }
   0xf   :  { %v68_v15 = vmax.bf16 %v475_v1, %v67_v12  ;;  %92 = vperm.xlu1 %464, %v78_v14  }
  0x11   :  { %459 = vmatprep.subr.msk.bf16.mxu0 %vm158_vm1, %v68_v15  ;;  %v160_v16 = vsel %vm158_vm1, %v68_v15, 0 }
  0x12   :  { %430 = vmatpush3.bf16.msra.mxu0 %v160_v16  ;;  %259 = vperm.xlu0 %463, %v245_v18   ;;  %v339_v18 = vld [vmem:[%s642_s7] sm:$0x7] }
  0x13   :  { %264 = vperm.xlu1 %464, %v246_v20   ;;  %451 = vmatprep.subr.bf16.mxu0 %v476_v63 }
  0x15   :  { %432 = vmatmul.mubr.msk.bf16.vlgmr.msra.gmra.mxu0 %vm145_vm0, %v466_v17 }
  0x16   :  { %435 = vmatprep.mubr.msk.bf16.mxu0 %vm145_vm0, %v467_v19  ;;  %249 = vperm.xlu0 %463, %v243_v21  }
  0x17   :  { %254 = vperm.xlu1 %464, %v244_v22  }
  0x1a   :  { %343 = vperm.xlu0 %463, %v340_v24  }
  0x1d   :  { %436 = vmatmul.mubr.msk.bf16.gmra.mxu0 %vm145_vm0, %v468_v23 }
  0x1e   :  { %455 = vmatprep.mubr.msk.bf16.mxu0 %vm477_vm3, %v476_v63 }
  0x7d   :  { %v118_v28 = vpop.permute.xlu0 %117 }
  0x7e   :  { %v108_v26 = vpop.permute.xlu1 %107 }
  0x81   :  { %v123_v33 = vpop.permute.xlu0 %122 }
  0x82   :  { %v113_v31 = vpop.permute.xlu1 %112 }
  0x85   :  { %v98_v41 = vpop.permute.xlu0 %97 }
  0x86   :  { %v103_v37 = vpop.permute.xlu1 %102 }
  0x89   :  { %v88_v55 = vpop.permute.xlu0 %87 }
  0x8a   :  { %v93_v51 = vpop.permute.xlu1 %92 }
  0x8d   :  { %v260_v0 = vpop.permute.xlu0 %259 }
  0x8e   :  { %v265_v1 = vpop.permute.xlu1 %264 }
  0x91   :  { %v250_v6 = vpop.permute.xlu0 %249 }
  0x92   :  { %v255_v8 = vpop.permute.xlu1 %254 }
  0x95   :  { %v344_v19 = vpop.permute.xlu0 %343 }
  0xd5   :  { %v433_v27 = vpop.f32.mrf.mxu0 }
  0xd6   :  { %v205_v47 = vadd.f32 %v433_v27, %v98_v41 }
  0xd7   :  { %v196_v29 = vpop.f32.mrf.mxu0 }
  0xd8   :  { %v229_v56 = vmax.f32 %v205_v47, 0.0  ;;  %v197_v57 = vadd.f32 %v196_v29, %v88_v55 }
  0xd9   :  { %v434_v30 = vpop.f32.mrf.mxu0 }
  0xda   :  { %v208_v43 = vadd.f32 %v434_v30, %v103_v37  ;;  %v227_v60 = vmax.f32 %v197_v57, 0.0 }
  0xdb   :  { %v199_v32 = vpop.f32.mrf.mxu0 }
  0xdc   :  { %v230_v52 = vmax.f32 %v208_v43, 0.0  ;;  %v200_v53 = vadd.f32 %v199_v32, %v93_v51 }
  0xdd   :  { %v437_v34 = vpop.f32.mrf.mxu0 }
  0xde   :  { %v221_v36 = vadd.f32 %v437_v34, %v118_v28  ;;  %v236_v58 = vpack.c.bf16 %v230_v52, %v229_v56  ;;  %v228_v59 = vmax.f32 %v200_v53, 0.0 }
  0xdf   :  { %v212_v35 = vpop.f32.mrf.mxu0 }
  0xe0   :  { %v213_v39 = vadd.f32 %v212_v35, %v108_v26  ;;  %v233_v44 = vmax.f32 %v221_v36, 0.0  ;;  %v235_v61 = vpack.c.bf16 %v228_v59, %v227_v60 }
  0xe1   :  { %v438_v38 = vpop.f32.mrf.mxu0 }
  0xe2   :  { %v224_v40 = vadd.f32 %v438_v38, %v123_v33  ;;  %v231_v48 = vmax.f32 %v213_v39, 0.0 }
  0xe3   :  { %v215_v42 = vpop.f32.mrf.mxu0 }
  0xe4   :  { %v234_v45 = vmax.f32 %v224_v40, 0.0  ;;  %v216_v46 = vadd.f32 %v215_v42, %v113_v31 }
  0xe6   :  { %v232_v49 = vmax.f32 %v216_v46, 0.0  ;;  %v238_v50 = vpack.c.bf16 %v234_v45, %v233_v44 }
  0xe8   :  { %v237_v54 = vpack.c.bf16 %v232_v49, %v231_v48  ;;  %439 = vmatprep.subr.bf16.mxu1 %v238_v50 }
  0xe9   :  { %440 = vmatpush3.bf16.msra.mxu1 %v238_v50 }
  0xea   :  { %441 = vmatprep.subr.bf16.mxu1 %v237_v54 }
  0xed   :  { %442 = vmatpush3.bf16.msra.mxu1 %v237_v54 }
  0xee   :  { %443 = vmatprep.subr.bf16.mxu1 %v236_v58 }
  0xf1   :  { %444 = vmatpush3.bf16.msra.mxu1 %v236_v58 }
  0xf2   :  { %445 = vmatprep.subr.bf16.mxu1 %v235_v61 }
  0xf5   :  { %446 = vmatpush3.bf16.msra.mxu1 %v235_v61 }
  0xf8   :  { %448 = vmatmul.mubr.msk.bf16.vlgmr.msra.gmra.mxu1 %vm277_vm2, %v470_v62 }
 0x1b8   :  { %v449_v2 = vpop.f32.mrf.mxu1 }
 0x1b9   :  { %v327_v4 = vadd.f32 %v449_v2, %v260_v0 }
 0x1ba   :  { %v318_v3 = vpop.f32.mrf.mxu1 }
 0x1bb   :  { %v335_v10 = vmax.f32 %v327_v4, 0.0  ;;  %v319_v11 = vadd.f32 %v318_v3, %v250_v6 }
 0x1bc   :  { %v450_v5 = vpop.f32.mrf.mxu1 }
 0x1bd   :  { %v330_v7 = vadd.f32 %v450_v5, %v265_v1  ;;  %v333_v16 = vmax.f32 %v319_v11, 0.0 }
 0x1be   :  { %v321_v9 = vpop.f32.mrf.mxu1 }
 0x1bf   :  { %v336_v12 = vmax.f32 %v330_v7, 0.0  ;;  %v322_v13 = vadd.f32 %v321_v9, %v255_v8 }
 0x1c1   :  { %v338_v14 = vpack.c.bf16 %v336_v12, %v335_v10  ;;  %v334_v15 = vmax.f32 %v322_v13, 0.0 }
 0x1c3   :  { %452 = vmatpush3.bf16.msra.mxu0 %v338_v14  ;;  %v337_v17 = vpack.c.bf16 %v334_v15, %v333_v16 }
 0x1c4   :  { %453 = vmatprep.subr.bf16.mxu0 %v476_v63 }
 0x1c7   :  { %454 = vmatpush3.bf16.msra.mxu0 %v337_v17 }
 0x1ca   :  { %456 = vmatmul.mubr.msk.bf16.vlgmr.msra.gmra.mxu0 %vm346_vm4, %v339_v18 }
 0x28a   :  { %v384_v20 = vpop.f32.mrf.mxu0 }
 0x28b   :  { %v385_v21 = vadd.f32 %v384_v20, %v344_v19 }
 0x28c   :  { %v457_v22 = vpop.f32.mrf.mxu0 }
 0x28d   :  { %v414_v23 = vmul.f32 -1.442695, %v385_v21 }
 0x28e   :  { %v387_v24 = vpop.f32.mrf.mxu0 }
 0x28f   :  { %471 = vpow2.f32 %v414_v23 }
 0x290   :  { %v458_v25 = vpop.f32.mrf.mxu0 }
 0x29c   :  { %v472_v26 = vpop.eup %471 }
 0x29d   :  { %v393_v27 = vadd.f32 1.0, %v472_v26 }
 0x29f   :  { %473 = vrcp.f32 %v393_v27 }
 0x2ac   :  { %v474_v28 = vpop.eup %473 }
 0x2ad   :  { %396 = vst [vmem:[%s643_s9] sm:$0x3f] %v474_v28 }

</bundles_post_ra>
